<compile_context>
chip_gen: v6e
topology: v6e:2x2x1
jax: 0.10.0
libtpu: 0.0.40
codegen_flags: <defaults>
</compile_context>

<pallas_src>
import jax
import jax.numpy as jnp
from jax.experimental import pallas as pl
from jax.experimental.pallas import tpu as pltpu


def _mlp_kernel(x_ref, w1_ref, b1_ref, w2_ref, b2_ref, o_ref):
    # x_ref: (C, TN) channels-first tile; TN tokens live on the 128-lane axis.
    # fc1 (1x1 conv): (Hd, C) @ (C, TN) + b1   (bias broadcasts over lanes)
    h = jnp.dot(w1_ref[...], x_ref[...].astype(jnp.float32),
                preferred_element_type=jnp.float32) + b1_ref[...]
    h = jnp.maximum(h, 0.0)                    # ReLU; dropout = identity (eval)

    # fc2 (1x1 conv): (Hd, Hd) @ (Hd, TN) + b2
    y = jnp.dot(w2_ref[...], h, preferred_element_type=jnp.float32) + b2_ref[...]

    # Residual: re-read x from VMEM (3 vld slots) rather than keeping the
    # original x vregs live across both matmuls (avoids spills at large tiles).
    o_ref[...] = (y + x_ref[...].astype(jnp.float32)).astype(o_ref.dtype)


def _choose_token_tile(n_tokens, batch, channels, itemsize, *,
                       max_tile=32768, vmem_budget_bytes=12 << 20):
    """Pick a lane-dense (multiple of 128) token tile sized from a VMEM budget.

    Per-token VMEM cost ~= channels * (4*itemsize [2x-buffered in + out blocks]
    + 2*4 [f32 h/y intermediates]).  Also keeps the total grid >= 4 steps where
    possible so both v7x TensorCores get >= 2 tiles each for load balance."""
    n_blocks = pl.cdiv(n_tokens, 128)                     # 128-lane blocks / image
    per_token = channels * (4 * itemsize + 2 * 4)
    budget_blocks = max(1, (vmem_budget_bytes // per_token) // 128)
    tile_blocks = int(max(1, min(max_tile // 128, budget_blocks, n_blocks)))
    while batch * pl.cdiv(n_blocks, tile_blocks) < 4 and tile_blocks > 1:
        tile_blocks = int(pl.cdiv(tile_blocks, 2))
    return tile_blocks * 128


def mlp_pallas(x_nchw, w1, b1, w2, b2, *, max_tile_tokens=32768, io_dtype=None):
    """x_nchw: [B, C, H, W]; w1: [Hd, C]; b1: [Hd]; w2: [Hd, Hd]; b2: [Hd].

    io_dtype: optional activation I/O dtype (e.g. jnp.bfloat16) for ~2x HBM
    traffic reduction; compute stays f32 in-kernel.  Default keeps x's dtype.
    """
    B, C, H, W = x_nchw.shape
    Hd = w1.shape[0]
    assert Hd == C, "residual link requires hidden_dim == input_dim"

    if io_dtype is not None:
        x_nchw = x_nchw.astype(io_dtype)

    N = H * W
    itemsize = jnp.dtype(x_nchw.dtype).itemsize
    tile_n = _choose_token_tile(N, B, C, itemsize, max_tile=max_tile_tokens)

    # NCHW -> [B, C, N]: contiguous reshape, no transpose, no extra HBM traffic.
    # No padding: grid uses cdiv and Pallas masks OOB writes of the last block.
    x3 = x_nchw.reshape(B, C, N)

    w1f = w1.astype(jnp.float32)
    w2f = w2.astype(jnp.float32)
    b1_c = b1.reshape(Hd, 1).astype(jnp.float32)   # lane-broadcast biases
    b2_c = b2.reshape(Hd, 1).astype(jnp.float32)

    grid = (B, pl.cdiv(N, tile_n))
    cost = pl.CostEstimate(
        flops=4 * B * N * C * Hd,                              # two matmuls
        transcendentals=0,
        bytes_accessed=B * N * (C + Hd) * itemsize
        + (Hd * C + Hd * Hd + 2 * Hd) * 4,
    )

    out3 = pl.pallas_call(
        _mlp_kernel,
        out_shape=jax.ShapeDtypeStruct((B, Hd, N), x_nchw.dtype),
        grid_spec=pltpu.PrefetchScalarGridSpec(
            num_scalar_prefetch=0,
            grid=grid,
            in_specs=[
                pl.BlockSpec((None, C, tile_n), lambda b, j: (b, 0, j)),  # x tile
                pl.BlockSpec((Hd, C), lambda b, j: (0, 0)),               # w1 (resident)
                pl.BlockSpec((Hd, 1), lambda b, j: (0, 0)),               # b1
                pl.BlockSpec((Hd, Hd), lambda b, j: (0, 0)),              # w2 (resident)
                pl.BlockSpec((Hd, 1), lambda b, j: (0, 0)),               # b2
            ],
            out_specs=pl.BlockSpec((None, Hd, tile_n), lambda b, j: (b, 0, j)),
        ),
        compiler_params=pltpu.CompilerParams(
            dimension_semantics=("parallel", "parallel"),
            vmem_limit_bytes=32 * 1024 * 1024,   # explicit: safe on v5e/v6e/v7x
        ),
        cost_estimate=cost,
    )(x3, w1f, b1_c, w2f, b2_c)

    # Restore NCHW (free reshape); no slice needed (no padding was added).
    return out3.reshape(B, Hd, H, W)


if __name__ == "__main__":
    # Small shapes consistent with the module (input_dim == hidden_dim for residual).
    B, C, H, W = 2, 32, 16, 16
    hidden_dim = C

    key = jax.random.PRNGKey(0)
    kx, kw1, kb1, kw2, kb2 = jax.random.split(key, 5)

    x = jax.random.normal(kx, (B, C, H, W), dtype=jnp.float32)
    # Conv2d(1x1) weights [out, in, 1, 1] represented as [out, in].
    w1 = jax.random.normal(kw1, (hidden_dim, C), dtype=jnp.float32) * 0.1
    b1 = jax.random.normal(kb1, (hidden_dim,), dtype=jnp.float32) * 0.1
    w2 = jax.random.normal(kw2, (hidden_dim, hidden_dim), dtype=jnp.float32) * 0.1
    b2 = jax.random.normal(kb2, (hidden_dim,), dtype=jnp.float32) * 0.1

    out = jax.block_until_ready(mlp_pallas(x, w1, b1, w2, b2))

    # Pure-JAX reference (1x1 conv == channel matmul), eval-mode dropout.
    h = jnp.maximum(jnp.einsum("oc,bchw->bohw", w1, x) + b1[None, :, None, None], 0.0)
    ref = jnp.einsum("oi,bihw->bohw", w2, h) + b2[None, :, None, None] + x
    assert out.shape == (B, C, H, W)
    assert jnp.max(jnp.abs(out - ref)) < 1e-4

    print("KERNEL_OK")
</pallas_src>

<mosaic_0001>
module attributes {stable_mosaic.version = 11 : i64} {
  func.func @_mlp_kernel(%arg0: i32, %arg1: i32, %arg2: memref<1x32x128xf32, #tpu.memory_space<vmem>>, %arg3: memref<32x32xf32, #tpu.memory_space<vmem>>, %arg4: memref<32x1xf32, #tpu.memory_space<vmem>>, %arg5: memref<32x32xf32, #tpu.memory_space<vmem>>, %arg6: memref<32x1xf32, #tpu.memory_space<vmem>>, %arg7: memref<1x32x128xf32, #tpu.memory_space<vmem>>) attributes {dimension_semantics = [#tpu.dimension_semantics<parallel>, #tpu.dimension_semantics<parallel>], iteration_bounds = array<i64: 2, 2>, scalar_prefetch = 0 : i64, scratch_operands = 0 : i64, tpu.core_type = #tpu.core_type<tc>, window_params = [{transform_indices = @transform_0, window_bounds = array<i64: 1, 32, 128>}, {pipeline_mode = #tpu.pipeline_mode<synchronous>, transform_indices = @transform_1, window_bounds = array<i64: 32, 32>}, {pipeline_mode = #tpu.pipeline_mode<synchronous>, transform_indices = @transform_2, window_bounds = array<i64: 32, 1>}, {pipeline_mode = #tpu.pipeline_mode<synchronous>, transform_indices = @transform_3, window_bounds = array<i64: 32, 32>}, {pipeline_mode = #tpu.pipeline_mode<synchronous>, transform_indices = @transform_4, window_bounds = array<i64: 32, 1>}, {transform_indices = @transform_5, window_bounds = array<i64: 1, 32, 128>}]} {
    %c0 = arith.constant 0 : index
    %c0_0 = arith.constant 0 : index
    %0 = vector.load %arg3[%c0, %c0_0] : memref<32x32xf32, #tpu.memory_space<vmem>>, vector<32x32xf32>
    %c0_1 = arith.constant 0 : index
    %c0_2 = arith.constant 0 : index
    %c0_3 = arith.constant 0 : index
    %1 = vector.load %arg2[%c0_1, %c0_2, %c0_3] : memref<1x32x128xf32, #tpu.memory_space<vmem>>, vector<1x32x128xf32>
    %2 = vector.shape_cast %1 : vector<1x32x128xf32> to vector<32x128xf32>
    %cst = arith.constant dense<0.000000e+00> : vector<32x128xf32>
    %3 = tpu.matmul %0, %2, %cst {dimension_numbers = #tpu.dot_dimension_numbers<[1], [0], [0], [1], [0, 0, 1, 1], [], []>} : vector<32x32xf32>, vector<32x128xf32>, vector<32x128xf32> -> vector<32x128xf32>
    %c0_4 = arith.constant 0 : index
    %c0_5 = arith.constant 0 : index
    %4 = vector.load %arg4[%c0_4, %c0_5] : memref<32x1xf32, #tpu.memory_space<vmem>>, vector<32x1xf32>
    %5 = vector.broadcast %4 : vector<32x1xf32> to vector<32x128xf32>
    %6 = arith.addf %3, %5 : vector<32x128xf32>
    %cst_6 = arith.constant 0.000000e+00 : f32
    %7 = vector.broadcast %cst_6 : f32 to vector<32x128xf32>
    %8 = arith.maximumf %6, %7 : vector<32x128xf32>
    %c0_7 = arith.constant 0 : index
    %c0_8 = arith.constant 0 : index
    %9 = vector.load %arg5[%c0_7, %c0_8] : memref<32x32xf32, #tpu.memory_space<vmem>>, vector<32x32xf32>
    %cst_9 = arith.constant dense<0.000000e+00> : vector<32x128xf32>
    %10 = tpu.matmul %9, %8, %cst_9 {dimension_numbers = #tpu.dot_dimension_numbers<[1], [0], [0], [1], [0, 0, 1, 1], [], []>} : vector<32x32xf32>, vector<32x128xf32>, vector<32x128xf32> -> vector<32x128xf32>
    %c0_10 = arith.constant 0 : index
    %c0_11 = arith.constant 0 : index
    %11 = vector.load %arg6[%c0_10, %c0_11] : memref<32x1xf32, #tpu.memory_space<vmem>>, vector<32x1xf32>
    %12 = vector.broadcast %11 : vector<32x1xf32> to vector<32x128xf32>
    %13 = arith.addf %10, %12 : vector<32x128xf32>
    %c0_12 = arith.constant 0 : index
    %c0_13 = arith.constant 0 : index
    %c0_14 = arith.constant 0 : index
    %14 = vector.load %arg2[%c0_12, %c0_13, %c0_14] : memref<1x32x128xf32, #tpu.memory_space<vmem>>, vector<1x32x128xf32>
    %15 = vector.shape_cast %14 : vector<1x32x128xf32> to vector<32x128xf32>
    %16 = arith.addf %13, %15 : vector<32x128xf32>
    %c0_15 = arith.constant 0 : index
    %c0_16 = arith.constant 0 : index
    %c0_17 = arith.constant 0 : index
    %17 = vector.load %arg7[%c0_15, %c0_16, %c0_17] : memref<1x32x128xf32, #tpu.memory_space<vmem>>, vector<1x32x128xf32>
    %18 = vector.shape_cast %17 : vector<1x32x128xf32> to vector<32x128xf32>
    %19 = vector.shape_cast %16 : vector<32x128xf32> to vector<1x32x128xf32>
    tpu.vector_store %arg7[%c0_15, %c0_16, %c0_17], %19 {strides = array<i32>} : memref<1x32x128xf32, #tpu.memory_space<vmem>>, vector<1x32x128xf32>,
    return
  }
  func.func @transform_0(%arg0: i32, %arg1: i32) -> (i32, i32, i32) {
    %c0_i32 = arith.constant 0 : i32
    %c0_i32_0 = arith.constant 0 : i32
    return %arg0, %c0_i32, %arg1 : i32, i32, i32
  }
  func.func @transform_1(%arg0: i32, %arg1: i32) -> (i32, i32) {
    %c0_i32 = arith.constant 0 : i32
    %c0_i32_0 = arith.constant 0 : i32
    %c0_i32_1 = arith.constant 0 : i32
    return %c0_i32, %c0_i32_0 : i32, i32
  }
  func.func @transform_2(%arg0: i32, %arg1: i32) -> (i32, i32) {
    %c0_i32 = arith.constant 0 : i32
    %c0_i32_0 = arith.constant 0 : i32
    %c0_i32_1 = arith.constant 0 : i32
    return %c0_i32, %c0_i32_0 : i32, i32
  }
  func.func @transform_3(%arg0: i32, %arg1: i32) -> (i32, i32) {
    %c0_i32 = arith.constant 0 : i32
    %c0_i32_0 = arith.constant 0 : i32
    %c0_i32_1 = arith.constant 0 : i32
    return %c0_i32, %c0_i32_0 : i32, i32
  }
  func.func @transform_4(%arg0: i32, %arg1: i32) -> (i32, i32) {
    %c0_i32 = arith.constant 0 : i32
    %c0_i32_0 = arith.constant 0 : i32
    %c0_i32_1 = arith.constant 0 : i32
    return %c0_i32, %c0_i32_0 : i32, i32
  }
  func.func @transform_5(%arg0: i32, %arg1: i32) -> (i32, i32, i32) {
    %c0_i32 = arith.constant 0 : i32
    %c0_i32_0 = arith.constant 0 : i32
    return %arg0, %c0_i32, %arg1 : i32, i32, i32
  }
}

</mosaic_0001>

<bundles_post_ra>
// kernel: tpu_custom_call.1
= control target key start
LH: loop header
LB: loop body
LE: loop exit
PB: predicated region body
PF: predicated region fallthrough
CT: control target
= control target key end

     0   :  { %s1195_s0 = inlined_call_operand.hbm [shape: f32[2,32,256], index: 0, kind: input, shape index: {}]   ;;  %s1196_s1 = inlined_call_operand.vmem [shape: f32[32,32], index: 1, kind: input, shape index: {}]   ;;  %s1197_s2 = inlined_call_operand.vmem [shape: f32[32,1], index: 2, kind: input, shape index: {}]   ;;  %s1198_s3 = inlined_call_operand.vmem [shape: f32[32,32], index: 3, kind: input, shape index: {}]   ;;  %s1199_s4 = inlined_call_operand.vmem [shape: f32[32,1], index: 4, kind: input, shape index: {}]   ;;  %s1200_s5 = inlined_call_operand.hbm [shape: f32[2,32,256], index: 5, kind: output, shape index: {}]  }
   0x1   :  { %1205 = sst [smem:[#allocation11_spill]] %s1200_s5 }
   0x2   :  { %10 = vsyncpa [#allocation3], 0 }
   0x3   :  { %12 = vsyncpa [#allocation3 + $0x1], 0 }
   0x4   :  { %13 = vsyncpa [#allocation4], 0 }
   0x5   :  { %15 = vsyncpa [#allocation4 + $0x1], 0  ;;  %s949_s18 = smov 0   ;;  %s951_s19 = smov 0  }
   0x6   :  { %s953_s20 = smov 0   ;;  %s955_s21 = smov 0  }
   0x7   :  { %s957_s22 = smov 0   ;;  %s959_s23 = smov 0  }
   0x8   :  { %s961_s24 = smov 0   ;;  %s963_s25 = smov 0  }
   0x9 LB: > { %1206 = sst [smem:[#allocation8_spill]] %s880_s18  ;;  %s630_s26 = sadd.s32 4294967295, %s908_s25   ;;  %s908_s25 = sphi %s963_s25, %s21_s25   ;;  %s904_s24 = sphi %s961_s24, %s1224_s24   ;;  %s900_s23 = sphi %s959_s23, %s1223_s23   ;;  %s896_s22 = sphi %s957_s22, %s1222_s22   ;;  %s892_s21 = sphi %s955_s21, %s1221_s21   ;;  %s888_s20 = sphi %s953_s20, %s1220_s20   ;;  %s884_s19 = sphi %s951_s19, %s1219_s19   ;;  %s880_s18 = sphi %s949_s18, %s1218_s18  }
   0xa   : > { %s631_s27 = sadd.s32 4294967294, %s908_s25   ;;  %s30_s28 = sadd.s32 1, %s900_s23 }
   0xb   : > { %s33_s29 = sadd.s32 1, %s904_s24  ;;  %p31_p0 = scmp.ge.s32.totalorder %s30_s28, 2 }
   0xc   : > { %s42_s30 = sadd.s32 1, %s888_s20  ;;  %p49_p1 = scmp.ne.s32.totalorder %s888_s20, %s884_s19 }
   0xd   : > { %p50_p2 = scmp.eq.s32.totalorder %s908_s25, 0  ;;  %s1226_s28 = smov (%p31_p0, %s30_s28), 0 }
   0xe   : > { %1207 = sst [smem:[#allocation9_spill]] %s1226_s28  ;;  %s1228_s29 = smov (!%p31_p0, %s33_s29), %s904_s24 }
   0xf   : > { %s38_s6 = ssub.s32 %s900_s23, %s1226_s28  ;;  %p1002_p3 = por %p50_p2, %p49_p1 }
  0x10   : > { %p35_p4 = scmp.ge.s32.totalorder %s1228_s29, 2  ;;  %p55_p5 = scmp.ne.s32.totalorder %s884_s19, %s880_s18 }
  0x11   : > { %p56_p6 = scmp.eq.s32.totalorder %s630_s26, 0  ;;  %p165_p7 = scmp.eq.s32.totalorder %s630_s26, 3 }
  0x12   : > { %s1230_s29 = smov (%p35_p4, %s1228_s29), 0  ;;  %p171_p10 = scmp.eq.s32.totalorder %s631_s27, 3 }
  0x13   : > { %1209 = sst [smem:[#allocation10_spill]] %s1230_s29  ;;  %p1010_p8 = por %p56_p6, %p55_p5 }
  0x14   : > { %p1014_p9 = por %p165_p7, %p49_p1  ;;  %s37_s10 = ssub.s32 %s904_s24, %s1230_s29 }
  0x15   : > { %s39_s11 = sor.u32 %s38_s6, %s37_s10  ;;  %p1020_p12 = por %p171_p10, %p55_p5 }
  0x16   : > { %p40_p11 = scmp.eq.s32.totalorder %s39_s11, 0  ;;  %p709_p13 = scmp.lt.s32.totalorder %s908_s25, 4 }
  0x17   : > { %s203_s13 = sand.u32 1, %s888_s20   ;;  %s635_s16 = sshll.u32 %s904_s24, 3 }
  0x18   : > { %s1027_s14 = scalar_select %p40_p11, %s888_s20, %s42_s30  }
  0x19   : > { %s634_s15 = sshll.u32 %s203_s13, 5  ;;  %s212_s17 = sadd.s32 %s900_s23, %s635_s16 }
  0x1a   : > { %s207_s26 = scalar_lea.vmem [#allocation2], %s634_s15  ;;  %s636_s18 = sshll.u32 %s212_s17, 7 }
  0x1b   : > { %s215_s28 = sshll.u32 %s207_s26, 4  ;;  %s214_s27 = scalar_lea.hbm %s1195_s0, %s636_s18  ;;  %s216_s28 = int_to_ptr.vmem [resolvable:$true] %s215_s28 }
  0x1c   : > { %p1036_p0 = pnand %p709_p13, %p1002_p3  ;;  %s204_s10 = scalar_lea.sflag [#allocation3], %s203_s13 }
  0x1d   : > { %s797_s30 = scalar_lea.vmem %s216_s28, 512  ;;  %s910_s11 = smov [#allocation2]  }
  0x1e   : > { %p786_p1 = pneg %p1036_p0  ;;  %p798_p2 = scmp.ne.s32.totalorder %s216_s28, %s797_s30 }
  0x1f   : > { %s802_s15 = sshll.u32 %s910_s11, 4  ;;  %s803_s15 = int_to_ptr.vmem [resolvable:$false] %s802_s15 }
  0x20   : > { %p800_p4 = pnand %p798_p2, %p786_p1  ;;  %s804_s16 = scalar_lea.vmem %s803_s15, 1024 }
  0x21   : > { %p805_p6 = scmp.lt.s32.totalorder %s216_s28, %s803_s15  ;;  %p806_p7 = scmp.lt.s32.totalorder %s804_s16, %s797_s30 }
  0x22   : > { %p801_p5 = pneg %p800_p4 }
  0x23   : > { %p807_p10 = por %p806_p7, %p805_p6 }
  0x25   : > { %p808_p11 = pnand %p807_p10, %p801_p5 }
  0x27   : > { %811 = shalt.err (!%p808_p11)
}
  0x28   : > { %s911_s5 = smov 256   ;;  %s912_s18 = smov 128  }
  0x29   : > { %s913_s29 = smov 8   ;;  %p637_p3 = scmp.ge.s32.totalorder %s908_s25, 1 }
  0x2a   : > { %704 = dma.hbm_to_vmem [thread:$0]  (!%p1036_p0), %s214_s27, 512, %s216_s28, %s204_s10, %s911_s5, %s912_s18, %s913_s29  }
  0x2b   : > { %p223_p13 = scmp.lt.s32.totalorder %s908_s25, 5 }
  0x2d   : > { %p224_p1 = pnand %p637_p3, %p223_p13 }
  0x2e   : > { %s1047_s7 = sand.u32 (!%p224_p1), 1, %s884_s19  }
  0x2f   : > { %227 = sbr.rel (%p224_p1) target bundleno = 490 (0x1ea), region = 40  ;;  %s638_s13 = sshll.u32 (!%p224_p1), %s1047_s7, 5 }
  0x30   : > { %s230_s17 = scalar_lea.sflag (!%p224_p1), [#allocation3], %s1047_s7  ;;  %s233_s26 = scalar_lea.vmem (!%p224_p1), [#allocation2], %s638_s13 }
  0x34   : > { %871 = dma.done.wait (%p1010_p8), %s230_s17, 512  }
  0x35   : > { %873 = vsyncadd (%p1010_p8), %s230_s17, 4294966784  ;;  %v914_v0 = vmov 0   ;;  %vm292_vm0 = vcmask 261120   ;;  %v1057_v1 = vld [vmem:[%s233_s26 + $0x18] sm:$0xff]  ;;  %v1059_v2 = vld [vmem:[%s233_s26 + $0x10] sm:$0xff]  ;;  %s649_s10 = sshll.u32 %s896_s22, 3 }
  0x36   : > { %782 = vset.pattern.permute.xlu0 %v914_v0  ;;  %783 = vset.pattern.permute.xlu1 %v914_v0  ;;  %v260_v3 = vld [vmem:[%s1196_s1] sm:$0xff]  ;;  %v1066_v4 = vld [vmem:[%s233_s26 + $0x8] sm:$0xff]  ;;  %v271_v5 = vld [vmem:[%s1197_s2 + $0x18] sm:$0xff]  ;;  %s539_s30 = sadd.s32 %s892_s21, %s649_s10  ;;  %s259_s11 = scalar_lea.vmem [#allocation5], %s638_s13 }
  0x37   : > { %669 = vmatprep.subr.mxu0 %v1057_v1  ;;  %677 = vmatprep.mubr.msk.f32.mxu0 %vm292_vm0, %v260_v3  ;;  %v269_v6 = vld [vmem:[%s1197_s2 + $0x8] sm:$0xff]  ;;  %v1077_v7 = vld [vmem:[%s233_s26] sm:$0xff]  ;;  %v270_v8 = vld [vmem:[%s1197_s2 + $0x10] sm:$0xff]  ;;  %s542_s15 = sshll.u32 %s259_s11, 4  ;;  %s650_s22 = sshll.u32 %s539_s30, 7  ;;  %s1135_s15 = int_to_ptr.vmem [resolvable:$true] %s542_s15 }
  0x38   : > { %670 = vmatpush3.msra.mxu0 %v1057_v1  ;;  %289 = vperm.xlu0 %782, %v271_v5   ;;  %v268_v9 = vld [vmem:[%s1197_s2] sm:$0xff]  ;;  %v261_v10 = vld [vmem:[%s1196_s1 + $0x8] sm:$0xff]  ;;  %v262_v11 = vld [vmem:[%s1196_s1 + $0x10] sm:$0xff]  ;;  %s1214_s16 = sld [smem:[#allocation11_spill]]  ;;  %s528_s18 = scalar_lea.sflag [#allocation4], %s1047_s7 }
  0x39   : > { %671 = vmatprep.subr.mxu0 %v1059_v2  ;;  %279 = vperm.xlu1 %783, %v269_v6   ;;  %v398_v12 = vld [vmem:[%s1199_s4] sm:$0xff]  ;;  %v399_v13 = vld [vmem:[%s1199_s4 + $0x8] sm:$0xff]  ;;  %v263_v14 = vld [vmem:[%s1196_s1 + $0x18] sm:$0xff]  ;;  %s812_s29 = scalar_lea.vmem %s1135_s15, 512  ;;  %s915_s17 = smov [#allocation5]  }
  0x3a   : > { %672 = vmatpush3.msra.mxu0 %v1059_v2  ;;  %v400_v15 = vld [vmem:[%s1199_s4 + $0x10] sm:$0xff]  ;;  %v401_v16 = vld [vmem:[%s1199_s4 + $0x18] sm:$0xff]  ;;  %v394_v17 = vld [vmem:[%s1198_s3] sm:$0xff]  ;;  %p813_p8 = scmp.ne.s32.totalorder %s1135_s15, %s812_s29  ;;  %s816_s26 = sshll.u32 %s915_s17, 4  ;;  %s817_s26 = int_to_ptr.vmem [resolvable:$false] %s816_s26 }
  0x3b   : > { %673 = vmatprep.subr.mxu0 %v1066_v4  ;;  %691 = vmatprep.mubr.msk.f32.mxu1 %vm292_vm0, %v394_v17  ;;  %v395_v34 = vld [vmem:[%s1198_s3 + $0x8] sm:$0xff]  ;;  %v396_v35 = vld [vmem:[%s1198_s3 + $0x10] sm:$0xff]  ;;  %v397_v36 = vld [vmem:[%s1198_s3 + $0x18] sm:$0xff]  ;;  %s818_s28 = scalar_lea.vmem %s817_s26, 1024  ;;  %p819_p4 = scmp.lt.s32.totalorder %s1135_s15, %s817_s26 }
  0x3c   : > { %674 = vmatpush3.msra.mxu0 %v1066_v4  ;;  %284 = vperm.xlu0 %782, %v270_v8   ;;  %p814_p0 = pnand %p813_p8, %p1014_p9  ;;  %p820_p5 = scmp.lt.s32.totalorder %s818_s28, %s812_s29 }
  0x3d   : > { %675 = vmatprep.subr.mxu0 %v1077_v7  ;;  %274 = vperm.xlu1 %783, %v268_v9  }
  0x3e   : > { %676 = vmatpush3.msra.mxu0 %v1077_v7  ;;  %s1141_s5 = scalar_lea.hbm %s1214_s16, %s650_s22  ;;  %p815_p2 = pneg %p814_p0 }
  0x3f   : > { %678 = vmatmul.mubr.msk.f32.vlgmr.msra.gmra.mxu0 %vm292_vm0, %v261_v10  ;;  %p821_p6 = por %p820_p5, %p819_p4 }
  0x40   : > { %680 = vmatprep.mubr.msk.f32.mxu0 %vm292_vm0, %v262_v11  ;;  %404 = vperm.xlu0 %782, %v398_v12  }
  0x41   : > { %409 = vperm.xlu1 %783, %v399_v13   ;;  %p822_p7 = pnand %p821_p6, %p815_p2 }
  0x43   : > { %681 = vmatmul.mubr.msk.f32.gmra.mxu0 %vm292_vm0, %v263_v14 }
  0x44   : > { %414 = vperm.xlu0 %782, %v400_v15  }
  0x45   : > { %419 = vperm.xlu1 %783, %v401_v16  }
  0xb3   : > { %v290_v18 = vpop.permute.xlu0 %289 }
  0xb4   : > { %v280_v20 = vpop.permute.xlu1 %279 }
  0xb7   : > { %v285_v24 = vpop.permute.xlu0 %284 }
  0xb8   : > { %v275_v29 = vpop.permute.xlu1 %274 }
  0xbb   : > { %v405_v38 = vpop.permute.xlu0 %404 }
  0xbc   : > { %v410_v37 = vpop.permute.xlu1 %409 }
  0xbf   : > { %v415_v48 = vpop.permute.xlu0 %414 }
  0xc0   : > { %v420_v44 = vpop.permute.xlu1 %419 }
  0xff   : > { %v679_v19 = vpop.f32.mrf.mxu0 }
 0x100   : > { %v377_v26 = vadd.f32 %v679_v19, %v280_v20 }
 0x101   : > { %v371_v21 = vpop.f32.mrf.mxu0 }
 0x102   : > { %v372_v30 = vadd.f32 %v371_v21, %v275_v29  ;;  %v391_v32 = vmax.f32 %v377_v26, 0.0 }
 0x103   : > { %v682_v22 = vpop.f32.mrf.mxu0 }
 0x104   : > { %v387_v23 = vadd.f32 %v682_v22, %v290_v18  ;;  %v390_v33 = vmax.f32 %v372_v30, 0.0 }
 0x105   : > { %v381_v25 = vpop.f32.mrf.mxu0 }
 0x106   : > { %v393_v27 = vmax.f32 %v387_v23, 0.0  ;;  %v382_v28 = vadd.f32 %v381_v25, %v285_v24 }
 0x108   : > { %v392_v31 = vmax.f32 %v382_v28, 0.0  ;;  %683 = vmatprep.subr.mxu1 %v393_v27 }
 0x109   : > { %684 = vmatpush3.msra.mxu1 %v393_v27 }
 0x10a   : > { %685 = vmatprep.subr.mxu1 %v392_v31 }
 0x10b   : > { %686 = vmatpush3.msra.mxu1 %v392_v31 }
 0x10c   : > { %687 = vmatprep.subr.mxu1 %v391_v32 }
 0x10d   : > { %688 = vmatpush3.msra.mxu1 %v391_v32 }
 0x10e   : > { %689 = vmatprep.subr.mxu1 %v390_v33 }
 0x10f   : > { %690 = vmatpush3.msra.mxu1 %v390_v33 }
 0x110   : > { %692 = vmatmul.mubr.msk.f32.vlgmr.msra.gmra.mxu1 %vm292_vm0, %v395_v34 }
 0x111   : > { %694 = vmatprep.mubr.msk.f32.mxu1 %vm292_vm0, %v396_v35 }
 0x114   : > { %695 = vmatmul.mubr.msk.f32.gmra.mxu1 %vm292_vm0, %v397_v36 }
 0x1d0   : > { %v693_v39 = vpop.f32.mrf.mxu1 }
 0x1d1   : > { %v506_v40 = vadd.f32 %v693_v39, %v410_v37 }
 0x1d2   : > { %v500_v41 = vpop.f32.mrf.mxu1 }
 0x1d3   : > { %v520_v42 = vadd.f32 %v506_v40, %v1066_v4  ;;  %v501_v43 = vadd.f32 %v500_v41, %v405_v38 }
 0x1d4   : > { %v696_v45 = vpop.f32.mrf.mxu1 }
 0x1d5   : > { %524 = vst [vmem:[%s259_s11 + $0x8] sm:$0xff] %v520_v42  ;;  %v519_v46 = vadd.f32 %v501_v43, %v1077_v7  ;;  %v516_v47 = vadd.f32 %v696_v45, %v420_v44 }
 0x1d6   : > { %v510_v49 = vpop.f32.mrf.mxu1 }
 0x1d7   : > { %523 = vst [vmem:[%s259_s11] sm:$0xff] %v519_v46  ;;  %v522_v50 = vadd.f32 %v516_v47, %v1057_v1  ;;  %v511_v51 = vadd.f32 %v510_v49, %v415_v48 }
 0x1d9   : > { %526 = vst [vmem:[%s259_s11 + $0x18] sm:$0xff] %v522_v50  ;;  %v521_v52 = vadd.f32 %v511_v51, %v1059_v2 }
 0x1db   : > { %525 = vst [vmem:[%s259_s11 + $0x10] sm:$0xff] %v521_v52 }
 0x1dc   : > { %825 = shalt.err (!%p822_p7)
}
 0x1dd   : > { %s826_s27 = scalar_lea.hbm %s1141_s5, 512  ;;  %s830_s10 = scalar_lea.hbm %s1214_s16, 2048 }
 0x1de   : > { %p827_p10 = scmp.ne.s32.totalorder %s1141_s5, %s826_s27  ;;  %p831_p13 = scmp.lt.s32.totalorder %s1141_s5, %s1214_s16 }
 0x1df   : > { %p832_p1 = scmp.lt.s32.totalorder %s830_s10, %s826_s27 }
 0x1e0   : > { %p828_p11 = pnand %p827_p10, %p1014_p9 }
 0x1e1   : > { %p833_p8 = por %p832_p1, %p831_p13 }
 0x1e2   : > { %p829_p3 = pneg %p828_p11 }
 0x1e4   : > { %p834_p0 = pnand %p833_p8, %p829_p3 }
 0x1e6   : > { %837 = shalt.err (!%p834_p0)
}
 0x1e7   : > { %s916_s22 = smov 128   ;;  %s917_s21 = smov 256  }
 0x1e8   : > { %s918_s13 = smov 8  }
 0x1e9   : > { %699 = dma.vmem_to_hbm [thread:$0]  (%p1014_p9), %s1135_s15, 512, %s1141_s5, %s528_s18, %s916_s22, %s917_s21, %s918_s13  }
 0x1ea PF: > { %s1215_s29 = sld [smem:[#allocation8_spill]]  ;;  %p710_p2 = scmp.ge.s32.totalorder %s908_s25, 2 }
 0x1ec   : > { %p706_p4 = pnand %p710_p2, %p1020_p12 }
 0x1ee   : > { %p707_p5 = pneg %p706_p4 }
 0x1f0   : > { %s557_s17 = sand.u32 1, %s1215_s29  }
 0x1f1   : > { %s558_s26 = scalar_lea.sflag [#allocation4], %s557_s17 }
 0x1f2   : > { %875 = dma.done.wait (%p707_p5), %s558_s26, 512  }
 0x1f3   : > { %877 = vsyncadd (%p707_p5), %s558_s26, 4294966784  ;;  %s21_s25 = sadd.s32 1, %s908_s25   ;;  %s1216_s9 = sld [smem:[#allocation9_spill]] }
 0x1f4   : > { %p18_p6 = scmp.ge.s32.totalorder %s21_s25, 6   ;;  %s1217_s7 = sld [smem:[#allocation10_spill]] }
 0x1f5   : > { %s1218_s18 = smov %s884_s19  ;;  %s1219_s19 = smov %s888_s20 }
 0x1f6   : > { %s1220_s20 = smov %s1027_s14  ;;  %s1221_s21 = smov %s900_s23 }
 0x1f7   : > { %s1222_s22 = smov %s904_s24  ;;  %20 = sbr.rel (!%p18_p6) target bundleno = 9 (0x9), region = 85 }
 0x1f9   : > { %s1223_s23 = smov %s1216_s9 }
 0x1fa   : > { %s1224_s24 = smov %s1217_s7 }
 0x1fc   :  { %563 = vsyncpa [#allocation3], 1 }
 0x1fd   :  { %565 = vsyncpa [#allocation3 + $0x1], 1 }
 0x1fe   :  { %566 = vsyncpa [#allocation4], 1 }
 0x1ff   :  { %568 = vsyncpa [#allocation4 + $0x1], 1 }

</bundles_post_ra>
